<compile_context>
chip_gen: v7x
topology: tpu7x:2x2x1
jax: 0.10.0
libtpu: 0.0.40
codegen_flags: <defaults>
</compile_context>

<pallas_src>
import functools
import math

import jax
import jax.numpy as jnp
from jax.experimental import pallas as pl
from jax.experimental.pallas import tpu as pltpu


def _round_up(n, m):
    return ((n + m - 1) // m) * m


def _make_fused_mlp_kernel(n_layers, compute_dtype):
    """o = relu(...relu(relu(x @ W0 + b0) @ W1 + b1)... @ W_{L-1} + b_{L-1})."""

    def kernel(*refs):
        x_ref = refs[0]
        o_ref = refs[-1]
        wb_refs = refs[1:-1]  # (w0, b0, w1, b1, ...)
        x = x_ref[...]
        if compute_dtype is not None:
            x = x.astype(compute_dtype)
        for l in range(n_layers):
            w = wb_refs[2 * l][...]
            b = wb_refs[2 * l + 1][...]          # (1, D_out) f32 -> broadcasts over rows
            # MXU matmul with f32 accumulate; bias add + ReLU on the f32 accumulator
            # (keeps v5e's non-bf16 VPU path clean).
            y = jnp.dot(x, w, preferred_element_type=jnp.float32) + b
            x = jnp.maximum(y, 0.0)
            if compute_dtype is not None and l + 1 < n_layers:
                x = x.astype(compute_dtype)       # next layer's MXU inputs in bf16
        o_ref[...] = x.astype(o_ref.dtype)

    return kernel


def _fused_mlp_impl(params, x, *, tile_b_max, compute_dtype):
    B, D_in = x.shape
    n_layers = len(params)
    assert n_layers >= 1

    dims = [D_in] + [w.shape[1] for (w, _) in params]
    d_out = dims[-1]
    d_out_p = _round_up(d_out, 128)  # lane-dense final output only

    # --- params: optional bf16 cast; pad only the last layer's output columns ---
    wdtype = compute_dtype if compute_dtype is not None else x.dtype
    flat_wb = []
    for l, (w, b) in enumerate(params):
        w = w.astype(wdtype)
        b = b.astype(jnp.float32)
        if l == n_layers - 1 and d_out_p != d_out:
            w = jnp.zeros((dims[l], d_out_p), w.dtype).at[:, :d_out].set(w)
            b = jnp.zeros((1, d_out_p), b.dtype).at[:, :d_out].set(b)
        flat_wb += [w, b]
    weight_bytes = sum(a.size * a.dtype.itemsize for a in flat_wb)  # Buffered(1): one copy

    # --- balanced batch tiling ---
    grid_b = max(1, pl.cdiv(B, tile_b_max))
    if grid_b == 1 and B >= 16:
        grid_b = 2  # keep both v7x TensorCores busy via the "parallel" batch axis
    tile_b = max(8, _round_up(pl.cdiv(B, grid_b), 8))

    # v7x VMEM guard (~48 MiB of its 64 MiB physical): shrink the batch tile if the
    # resident weights + per-tile activation/IO traffic would overflow.
    max_dim_p = max(_round_up(d, 128) for d in dims)
    per_row_bytes = (2 * (D_in + d_out_p) * x.dtype.itemsize   # double-buffered in/out tiles
                     + 2 * max_dim_p * 4)                       # f32 accumulator + activation
    while tile_b > 8 and weight_bytes + tile_b * per_row_bytes > (48 << 20):
        tile_b = max(8, _round_up(tile_b // 2, 8))

    grid_b = pl.cdiv(B, tile_b)
    Bp = grid_b * tile_b
    xp = x if Bp == B else jnp.zeros((Bp, D_in), x.dtype).at[:B].set(x)

    # --- BlockSpecs: x / out tiled over batch; weights & biases fully resident ---
    in_specs = [pl.BlockSpec((tile_b, D_in), lambda i: (i, 0))]
    for l in range(n_layers):
        in_specs.append(pl.BlockSpec(flat_wb[2 * l].shape, lambda i: (0, 0),
                                     pipeline_mode=pl.Buffered(1)))
        in_specs.append(pl.BlockSpec(flat_wb[2 * l + 1].shape, lambda i: (0, 0),
                                     pipeline_mode=pl.Buffered(1)))
    out_spec = pl.BlockSpec((tile_b, d_out_p), lambda i: (i, 0))

    # --- explicit VMEM budget (default scoped limit is far below physical) ---
    needed = weight_bytes + tile_b * per_row_bytes
    vmem_limit = min(100 << 20, max(16 << 20, int(needed * 1.5) + (2 << 20)))

    out_padded = pl.pallas_call(
        _make_fused_mlp_kernel(n_layers, compute_dtype),
        out_shape=jax.ShapeDtypeStruct((Bp, d_out_p), x.dtype),
        grid_spec=pltpu.PrefetchScalarGridSpec(
            num_scalar_prefetch=0,
            grid=(grid_b,),
            in_specs=in_specs,
            out_specs=out_spec,
        ),
        compiler_params=pltpu.CompilerParams(
            dimension_semantics=("parallel",),
            vmem_limit_bytes=vmem_limit,
        ),
    )(xp, *flat_wb)

    # TODO(synk): if the consumer tolerates lane-padded features, return
    # out_padded[:B] and skip the feature-dim slice (saves one HBM pass).
    return out_padded[:B, :d_out]


@functools.partial(jax.jit, static_argnames=("tile_b_max", "compute_dtype"))
def fused_mlp(params, x, *, tile_b_max=512, compute_dtype=None):
    """params: list of (w: [d_in, d_out], b: [1, d_out]); x: [B, D_in].

    Params are traced (not baked into the executable), so weight updates are safe."""
    return _fused_mlp_impl(params, x, tile_b_max=tile_b_max, compute_dtype=compute_dtype)


def init_linear_params(key, d_in, d_out, dtype=jnp.float32):
    """PyTorch-style nn.Linear init: U(-1/sqrt(d_in), 1/sqrt(d_in)).

    Weight returned pre-transposed as [d_in, d_out]; bias as [1, d_out]."""
    kw, kb = jax.random.split(key)
    bound = 1.0 / math.sqrt(d_in)
    w = jax.random.uniform(kw, (d_in, d_out), dtype, minval=-bound, maxval=bound)
    b = jax.random.uniform(kb, (1, d_out), dtype, minval=-bound, maxval=bound)
    return w, b


class CondVariationalEncoderPallas:
    """Pallas implementation of CondVariationalEncoder with default flags
    (batch_normalization=False, dropout_rate=None): a chain of Linear+ReLU layers,
    fused into a single pallas_call. Set compute_dtype=jnp.bfloat16 for the
    bf16-MXU path (f32 accumulate) on v6e/v7x."""

    def __init__(self, encoder_dims, key, compute_dtype=None):
        self.encoder_dims = list(encoder_dims)
        self.compute_dtype = compute_dtype
        n_layers = len(encoder_dims) - 1
        keys = jax.random.split(key, n_layers)
        self.params = [
            init_linear_params(keys[i], encoder_dims[i], encoder_dims[i + 1])
            for i in range(n_layers)
        ]

    def __call__(self, x):
        return fused_mlp(self.params, x, compute_dtype=self.compute_dtype)


def _reference(x, params):
    # Pure-JAX reference for correctness check.
    for w, b in params:
        x = jnp.maximum(x @ w + b, 0.0)
    return x


if __name__ == "__main__":
    key = jax.random.PRNGKey(0)
    k_param, k_x1, k_x2, k_x3 = jax.random.split(key, 4)

    encoder_dims = [32, 64, 48]  # 32->64->48, Linear+ReLU each
    model = CondVariationalEncoderPallas(encoder_dims, k_param)

    # Case 1: aligned batch (single tile).
    x1 = jax.random.normal(k_x1, (8, encoder_dims[0]), dtype=jnp.float32)
    out1 = jax.block_until_ready(model(x1))
    ref1 = _reference(x1, model.params)
    assert out1.shape == (8, encoder_dims[-1]), out1.shape
    assert jnp.allclose(out1, ref1, atol=1e-5, rtol=1e-5), "mismatch vs reference (B=8)"

    # Case 2: non-multiple-of-8 batch exercises the padded tail path.
    x2 = jax.random.normal(k_x2, (10, encoder_dims[0]), dtype=jnp.float32)
    out2 = jax.block_until_ready(model(x2))
    ref2 = _reference(x2, model.params)
    assert out2.shape == (10, encoder_dims[-1]), out2.shape
    assert jnp.allclose(out2, ref2, atol=1e-5, rtol=1e-5), "mismatch vs reference (B=10)"

    # Case 3: B >= 16 exercises the multi-tile (grid_b >= 2, "parallel") path.
    x3 = jax.random.normal(k_x3, (20, encoder_dims[0]), dtype=jnp.float32)
    out3 = jax.block_until_ready(model(x3))
    ref3 = _reference(x3, model.params)
    assert out3.shape == (20, encoder_dims[-1]), out3.shape
    assert jnp.allclose(out3, ref3, atol=1e-5, rtol=1e-5), "mismatch vs reference (B=20)"

    # Case 4: bf16 compute path (f32 accumulate) — looser tolerance.
    model_bf16 = CondVariationalEncoderPallas(encoder_dims, k_param,
                                              compute_dtype=jnp.bfloat16)
    out4 = jax.block_until_ready(model_bf16(x3))
    assert out4.shape == (20, encoder_dims[-1]), out4.shape
    assert jnp.allclose(out4, ref3, atol=3e-2, rtol=3e-2), "mismatch vs reference (bf16)"

    print("KERNEL_OK")
</pallas_src>

<mosaic_0001>
module attributes {stable_mosaic.version = 11 : i64} {
  func.func @kernel(%arg0: i32, %arg1: memref<8x32xf32, #tpu.memory_space<vmem>>, %arg2: memref<32x64xf32, #tpu.memory_space<vmem>>, %arg3: memref<1x64xf32, #tpu.memory_space<vmem>>, %arg4: memref<64x128xf32, #tpu.memory_space<vmem>>, %arg5: memref<1x128xf32, #tpu.memory_space<vmem>>, %arg6: memref<8x128xf32, #tpu.memory_space<vmem>>) attributes {dimension_semantics = [#tpu.dimension_semantics<parallel>], iteration_bounds = array<i64: 1>, scalar_prefetch = 0 : i64, scratch_operands = 0 : i64, tpu.core_type = #tpu.core_type<tc>, window_params = [{transform_indices = @transform_0, window_bounds = array<i64: 8, 32>}, {pipeline_mode = #tpu.pipeline_mode<synchronous>, transform_indices = @transform_1, window_bounds = array<i64: 32, 64>}, {pipeline_mode = #tpu.pipeline_mode<synchronous>, transform_indices = @transform_2, window_bounds = array<i64: 1, 64>}, {pipeline_mode = #tpu.pipeline_mode<synchronous>, transform_indices = @transform_3, window_bounds = array<i64: 64, 128>}, {pipeline_mode = #tpu.pipeline_mode<synchronous>, transform_indices = @transform_4, window_bounds = array<i64: 1, 128>}, {transform_indices = @transform_5, window_bounds = array<i64: 8, 128>}]} {
    %c0 = arith.constant 0 : index
    %c0_0 = arith.constant 0 : index
    %0 = vector.load %arg1[%c0, %c0_0] : memref<8x32xf32, #tpu.memory_space<vmem>>, vector<8x32xf32>
    %c0_1 = arith.constant 0 : index
    %c0_2 = arith.constant 0 : index
    %1 = vector.load %arg2[%c0_1, %c0_2] : memref<32x64xf32, #tpu.memory_space<vmem>>, vector<32x64xf32>
    %c0_3 = arith.constant 0 : index
    %c0_4 = arith.constant 0 : index
    %2 = vector.load %arg3[%c0_3, %c0_4] : memref<1x64xf32, #tpu.memory_space<vmem>>, vector<1x64xf32>
    %cst = arith.constant dense<0.000000e+00> : vector<8x64xf32>
    %3 = tpu.matmul %0, %1, %cst {dimension_numbers = #tpu.dot_dimension_numbers<[1], [0], [0], [1], [0, 0, 1, 1], [], []>} : vector<8x32xf32>, vector<32x64xf32>, vector<8x64xf32> -> vector<8x64xf32>
    %4 = vector.broadcast %2 : vector<1x64xf32> to vector<8x64xf32>
    %5 = arith.addf %3, %4 : vector<8x64xf32>
    %cst_5 = arith.constant 0.000000e+00 : f32
    %6 = vector.broadcast %cst_5 : f32 to vector<8x64xf32>
    %7 = arith.maximumf %5, %6 : vector<8x64xf32>
    %c0_6 = arith.constant 0 : index
    %c0_7 = arith.constant 0 : index
    %8 = vector.load %arg4[%c0_6, %c0_7] : memref<64x128xf32, #tpu.memory_space<vmem>>, vector<64x128xf32>
    %c0_8 = arith.constant 0 : index
    %c0_9 = arith.constant 0 : index
    %9 = vector.load %arg5[%c0_8, %c0_9] : memref<1x128xf32, #tpu.memory_space<vmem>>, vector<1x128xf32>
    %cst_10 = arith.constant dense<0.000000e+00> : vector<8x128xf32>
    %10 = tpu.matmul %7, %8, %cst_10 {dimension_numbers = #tpu.dot_dimension_numbers<[1], [0], [0], [1], [0, 0, 1, 1], [], []>} : vector<8x64xf32>, vector<64x128xf32>, vector<8x128xf32> -> vector<8x128xf32>
    %11 = vector.broadcast %9 : vector<1x128xf32> to vector<8x128xf32>
    %12 = arith.addf %10, %11 : vector<8x128xf32>
    %cst_11 = arith.constant 0.000000e+00 : f32
    %13 = vector.broadcast %cst_11 : f32 to vector<8x128xf32>
    %14 = arith.maximumf %12, %13 : vector<8x128xf32>
    %c0_12 = arith.constant 0 : index
    %c0_13 = arith.constant 0 : index
    %15 = vector.load %arg6[%c0_12, %c0_13] : memref<8x128xf32, #tpu.memory_space<vmem>>, vector<8x128xf32>
    tpu.vector_store %arg6[%c0_12, %c0_13], %14 {strides = array<i32>} : memref<8x128xf32, #tpu.memory_space<vmem>>, vector<8x128xf32>,
    return
  }
  func.func @transform_0(%arg0: i32) -> (i32, i32) {
    %c0_i32 = arith.constant 0 : i32
    %c0_i32_0 = arith.constant 0 : i32
    return %arg0, %c0_i32 : i32, i32
  }
  func.func @transform_1(%arg0: i32) -> (i32, i32) {
    %c0_i32 = arith.constant 0 : i32
    %c0_i32_0 = arith.constant 0 : i32
    %c0_i32_1 = arith.constant 0 : i32
    return %c0_i32, %c0_i32_0 : i32, i32
  }
  func.func @transform_2(%arg0: i32) -> (i32, i32) {
    %c0_i32 = arith.constant 0 : i32
    %c0_i32_0 = arith.constant 0 : i32
    %c0_i32_1 = arith.constant 0 : i32
    return %c0_i32, %c0_i32_0 : i32, i32
  }
  func.func @transform_3(%arg0: i32) -> (i32, i32) {
    %c0_i32 = arith.constant 0 : i32
    %c0_i32_0 = arith.constant 0 : i32
    %c0_i32_1 = arith.constant 0 : i32
    return %c0_i32, %c0_i32_0 : i32, i32
  }
  func.func @transform_4(%arg0: i32) -> (i32, i32) {
    %c0_i32 = arith.constant 0 : i32
    %c0_i32_0 = arith.constant 0 : i32
    %c0_i32_1 = arith.constant 0 : i32
    return %c0_i32, %c0_i32_0 : i32, i32
  }
  func.func @transform_5(%arg0: i32) -> (i32, i32) {
    %c0_i32 = arith.constant 0 : i32
    %c0_i32_0 = arith.constant 0 : i32
    return %arg0, %c0_i32 : i32, i32
  }
}

</mosaic_0001>

<bundles_post_ra>
// kernel: fused_mlp.1
= control target key start
LH: loop header
LB: loop body
LE: loop exit
PB: predicated region body
PF: predicated region fallthrough
CT: control target
= control target key end

     0   :  { %v307_v3 = vmov 0.0|0.0   ;;  %vm308_vm0 = vmmov 0   ;;  %v309_v6 = vmov 0.0   ;;  %s398_s0 = inlined_call_operand.vmem [shape: f32[8,32], index: 0, kind: input, shape index: {}]   ;;  %s399_s1 = inlined_call_operand.vmem [shape: f32[32,64], index: 1, kind: input, shape index: {}]   ;;  %s400_s2 = inlined_call_operand.vmem [shape: f32[1,64], index: 2, kind: input, shape index: {}]   ;;  %s401_s3 = inlined_call_operand.vmem [shape: f32[64,128], index: 3, kind: input, shape index: {}]   ;;  %s402_s4 = inlined_call_operand.vmem [shape: f32[1,128], index: 4, kind: input, shape index: {}]   ;;  %s403_s5 = inlined_call_operand.hbm [shape: f32[8,128], index: 5, kind: output, shape index: {}]  }
   0x1   :  { %v22_v0 = vld [vmem:[%s399_s1] sm:$0xff]  ;;  %v23_v1 = vld [vmem:[%s399_s1 + $0x8] sm:$0xff]  ;;  %v24_v2 = vld [vmem:[%s399_s1 + $0x10] sm:$0xff]  ;;  %261 = vmatprep.subr.bf16.mxu0 %v307_v3  ;;  %239 = vmatprep.mubr.msk.f32.mxu0 %vm308_vm0, %v309_v6 }
   0x2   :  { %v262_v4 = vpack.c.bf16 %v23_v1, %v22_v0  ;;  %v25_v5 = vld [vmem:[%s399_s1 + $0x18] sm:$0xff]  ;;  %v108_v7 = vld [vmem:[%s401_s3] sm:$0xff]  ;;  %267 = vmatprep.subr.bf16.mxu1 %v307_v3  ;;  %v109_v8 = vld [vmem:[%s401_s3 + $0x8] sm:$0xff]  ;;  %258 = vmatprep.mubr.msk.f32.mxu1 %vm308_vm0, %v309_v6 }
   0x3   :  { %v110_v9 = vld [vmem:[%s401_s3 + $0x10] sm:$0xff]  ;;  %v111_v10 = vld [vmem:[%s401_s3 + $0x18] sm:$0xff]  ;;  %v265_v11 = vpack.c.bf16 %v25_v5, %v24_v2  ;;  %v268_v12 = vpack.c.bf16 %v109_v8, %v108_v7 }
   0x4   :  { %263 = vmatpush3.bf16.msra.mxu0 %v262_v4 }
   0x5   :  { %264 = vmatprep.subr.bf16.mxu0 %v307_v3 }
   0x6   :  { %10 = vsyncpa [#allocation3], 0  ;;  %269 = vmatpush3.bf16.msra.mxu1 %v268_v12  ;;  %v271_v13 = vpack.c.bf16 %v111_v10, %v110_v9  ;;  %v112_v14 = vld [vmem:[%s401_s3 + $0x20] sm:$0xff]  ;;  %v113_v15 = vld [vmem:[%s401_s3 + $0x28] sm:$0xff]  ;;  %vm33_vm1 = vcmask 261120   ;;  %vm123_vm2 = vcmask 523264  }
   0x7   :  { %270 = vmatprep.subr.bf16.mxu1 %v307_v3  ;;  %v21_v16 = vld [vmem:[%s398_s0] sm:$0xff]  ;;  %v274_v17 = vpack.c.bf16 %v113_v15, %v112_v14  ;;  %v114_v18 = vld [vmem:[%s401_s3 + $0x30] sm:$0xff]  ;;  %v115_v19 = vld [vmem:[%s401_s3 + $0x38] sm:$0xff]  ;;  %s310_s21 = smov [#allocation2]  }
   0x8   :  { %266 = vmatpush3.bf16.msra.mxu0 %v265_v11  ;;  %v277_v20 = vpack.c.bf16 %v115_v19, %v114_v18  ;;  %v213_v21 = vld [vmem:[%s400_s2] ss:$0 sm:$0xff]  ;;  %s205_s22 = sshll.u32 %s310_s21, 4  ;;  %s206_s22 = int_to_ptr.vmem [resolvable:$true] %s205_s22 }
   0x9   :  { %v215_v26 = vld [vmem:[%s402_s4] ss:$0 sm:$0xff]  ;;  %s283_s3 = scalar_lea.vmem %s206_s22, 128  ;;  %p288_p1 = scmp.lt.s32.totalorder %s206_s22, %s206_s22 }
   0xa   :  { %272 = vmatpush3.bf16.msra.mxu1 %v271_v13  ;;  %p284_p0 = scmp.ne.s32.totalorder %s206_s22, %s283_s3  ;;  %p289_p2 = scmp.lt.s32.totalorder %s283_s3, %s283_s3 }
   0xb   :  { %240 = vmatmul.mubr.msk.f32.vlgmr.msra.gmra.mrb[0].mxu0 %vm33_vm1, %v21_v16  ;;  %273 = vmatprep.subr.bf16.mxu1 %v307_v3 }
   0xc   :  { %p290_p3 = por %p289_p2, %p288_p1 }
   0xe   :  { %275 = vmatpush3.bf16.msra.mxu1 %v274_v17  ;;  %p291_p4 = pnand %p290_p3, %p284_p0 }
   0xf   :  { %276 = vmatprep.subr.bf16.mxu1 %v307_v3 }
  0x12   :  { %278 = vmatpush3.bf16.msra.mxu1 %v277_v20 }
  0xde   :  { %v103_v22 = vpop.f32.mrb[0].mxu0 }
  0xdf   :  { %v104_v23 = vadd.f32 %v213_v21, %v103_v22  ;;  %v241_v24 = vpop.f32.mrb[1].mxu0 }
  0xe1   :  { %v107_v25 = vmax.f32 %v104_v23, 0.0 }
  0xe3   :  { %259 = vmatmul.mubr.msk.f32.vlgmr.msra.gmra.mrb[0].mxu1 %vm123_vm2, %v107_v25 }
 0x1b6   :  { %v193_v27 = vpop.f32.mrb[0].mxu1 }
 0x1b7   :  { %v194_v28 = vadd.f32 %v215_v26, %v193_v27  ;;  %v260_v29 = vpop.f32.mrb[1].mxu1 }
 0x1b9   :  { %v197_v30 = vmax.f32 %v194_v28, 0.0 }
 0x1bb   :  { %198 = vst [vmem:[#allocation2] sm:$0xff] %v197_v30 }
 0x1bc   :  { %294 = shalt.err (!%p291_p4)
}
 0x1bd   :  { %s295_s24 = scalar_lea.hbm %s403_s5, 128 }
 0x1be   :  { %p296_p5 = scmp.ne.s32.totalorder %s403_s5, %s295_s24  ;;  %p299_p6 = scmp.lt.u32.totalorder %s295_s24, %s403_s5 }
 0x1c0   :  { %p301_p7 = pnand %p299_p6, %p296_p5 }
 0x1c2   :  { %304 = shalt.err (!%p301_p7)
}
 0x1c3   :  { %208 = dma.vmem_to_hbm [thread:$0]  %s206_s22, 128, %s403_s5, [#allocation3]  }
 0x1c4   :  { %305 = dma.done.wait [#allocation3], 128  }
 0x1c5   :  { %306 = vsyncadd [#allocation3], 4294967168 }
 0x1c6   :  { %212 = vsyncpa [#allocation3], 1 }

</bundles_post_ra>
